<compile_context>
chip_gen: v7x
topology: tpu7x:2x2x1
jax: 0.10.0
libtpu: 0.0.40
codegen_flags: <defaults>
</compile_context>

<pallas_src>
import functools

import jax
import jax.numpy as jnp
from jax.experimental import pallas as pl
from jax.experimental.pallas import tpu as pltpu

BN_EPS = 1e-5
LANE = 128


def _round_up(n, m):
    return ((n + m - 1) // m) * m


# ----------------------------- Pallas kernel ------------------------------
def _make_fused_kernel(num_layers):
    """Kernel chaining `num_layers` Linear(+BN+ReLU) stages entirely in VMEM.

    Ref layout: x_ref, then per hidden layer (w, gamma, beta), for the final
    layer (w, b), then o_ref.  Weights are pre-transposed [Din, Dout_pad],
    stored bf16, zero-padded to lane-dense (multiple-of-128) output widths.
    """
    def kernel(*refs):
        x = refs[0][...].astype(jnp.bfloat16)               # [B, Din]
        idx = 1
        for layer in range(num_layers):
            last = layer == num_layers - 1
            w = refs[idx][...]                               # bf16 [Din, Dout_pad]
            # MXU matmul in bf16, f32 accumulation.
            y = jnp.dot(x, w, preferred_element_type=jnp.float32)
            if not last:
                gamma = refs[idx + 1][...]                   # f32 [1, Dout_pad]
                beta = refs[idx + 2][...]                    # f32 [1, Dout_pad]
                # BatchNorm1d, training mode, biased batch stats in f32.
                # One-pass stats: E[y], E[y^2].  (Hidden-layer Linear bias is
                # mathematically dead under the mean subtraction -> dropped.)
                inv_b = 1.0 / y.shape[0]
                mean = jnp.sum(y, axis=0, keepdims=True) * inv_b
                ex2 = jnp.sum(y * y, axis=0, keepdims=True) * inv_b
                var = ex2 - mean * mean
                scale = gamma * jax.lax.rsqrt(var + BN_EPS)  # [1, D] (EUP rsqrt)
                shift = beta - mean * scale                  # [1, D]
                y = y * scale + shift                        # one FMA on [B, D]
                y = jnp.maximum(y, 0.0)                      # ReLU
                idx += 3
            else:
                b = refs[idx + 1][...]                       # f32 [1, Dout_pad]
                y = y + b
                idx += 2
            x = y.astype(jnp.bfloat16)                       # bf16 into next MXU
        refs[idx][...] = y                                   # f32 lane-dense store
    return kernel


def _full_spec(shape):
    # Single block == full array; everything lives in VMEM.
    return pl.BlockSpec(shape, lambda: tuple(0 for _ in shape))


# ------------------------------ host wrappers ------------------------------
def init_mlp_params(key, input_size, hidden_layers):
    """nn.Linear-style init (uniform +/- 1/sqrt(fan_in)); BN gamma=1, beta=0.
    Weights stored torch-style as [out, in]; bias/BN params as [1, out]."""
    params = []
    prev = input_size
    for idx, h in enumerate(hidden_layers):
        key, kw, kb = jax.random.split(key, 3)
        bound = 1.0 / jnp.sqrt(prev)
        w = jax.random.uniform(kw, (h, prev), jnp.float32, -bound, bound)
        b = jax.random.uniform(kb, (1, h), jnp.float32, -bound, bound)
        last = idx == len(hidden_layers) - 1
        if last:
            params.append({"w": w, "b": b})
        else:
            params.append({"w": w, "b": b,
                           "gamma": jnp.ones((1, h), jnp.float32),
                           "beta": jnp.zeros((1, h), jnp.float32)})
        prev = h
    return params


def prepare_fused_params(params, input_size):
    """One-time host-side layout plumbing:
      * transpose weights to [Din, Dout] and cast to bf16,
      * zero-pad every OUTPUT feature dim up to a multiple of 128 (lane width)
        (the first layer's input dim stays unpadded so x needs no host pad),
      * drop hidden-layer biases (cancelled exactly by training-mode BN),
      * keep gamma/beta and the last-layer bias in f32.
    Padded columns of w/gamma/beta/bias are zero so padded lanes stay 0."""
    fused = []
    prev_dim = input_size                    # unpadded for layer 0
    n = len(params)
    for idx, p in enumerate(params):
        dout = p["w"].shape[0]
        dout_pad = _round_up(dout, LANE)
        wt = jnp.asarray(p["w"]).T                           # [Din, Dout]
        wt = jnp.pad(wt, ((0, prev_dim - wt.shape[0]), (0, dout_pad - dout)))
        wt = wt.astype(jnp.bfloat16)
        if idx != n - 1:
            g = jnp.pad(p["gamma"], ((0, 0), (0, dout_pad - dout)))
            bt = jnp.pad(p["beta"], ((0, 0), (0, dout_pad - dout)))
            fused.append((wt, g, bt))
        else:
            b = jnp.pad(p["b"], ((0, 0), (0, dout_pad - dout)))
            fused.append((wt, b))
        prev_dim = dout_pad
    return tuple(fused)


@functools.partial(jax.jit, static_argnames=("out_features",))
def mlp_forward(fused_params, x, out_features):
    """Single fused pallas_call for the whole MLP forward pass."""
    num_layers = len(fused_params)
    dout_pad = fused_params[-1][0].shape[1]
    B = x.shape[0]

    flat = [a for layer in fused_params for a in layer]

    # Advisory cost estimate (matmuls + BN/relu elementwise).
    flops = 0
    transcendentals = 0
    prev = x.shape[1]
    for layer in fused_params:
        d = layer[0].shape[1]
        flops += 2 * B * prev + 2 * B * prev * d
        if len(layer) == 3:                 # hidden layer: BN + ReLU
            flops += 6 * B * d
            transcendentals += d            # rsqrt per feature
        prev = d
    bytes_accessed = (4 * x.size + 4 * B * dout_pad
                      + sum(a.size * a.dtype.itemsize for a in flat))

    out_pad = pl.pallas_call(
        _make_fused_kernel(num_layers),
        out_shape=jax.ShapeDtypeStruct((B, dout_pad), jnp.float32),
        in_specs=[_full_spec(x.shape)] + [_full_spec(a.shape) for a in flat],
        out_specs=_full_spec((B, dout_pad)),
        compiler_params=pltpu.CompilerParams(vmem_limit_bytes=64 << 20),
        cost_estimate=pl.CostEstimate(
            flops=flops,
            transcendentals=transcendentals,
            bytes_accessed=bytes_accessed),
    )(x, *flat)
    # NOTE: downstream consumers that accept the lane-dense 128-wide padded
    # output can skip this slice entirely (padded columns are exactly 0).
    return out_pad[:, :out_features]


def mlp_reference(params, x):
    """Pure-JAX f32 reference with the original module's semantics."""
    n = len(params)
    for idx, p in enumerate(params):
        y = x @ p["w"].T + p["b"]
        if idx != n - 1:
            mean = jnp.mean(y, axis=0, keepdims=True)
            var = jnp.mean((y - mean) ** 2, axis=0, keepdims=True)
            y = p["gamma"] * (y - mean) * jax.lax.rsqrt(var + BN_EPS) + p["beta"]
            y = jnp.maximum(y, 0.0)
        x = y
    return x


if __name__ == "__main__":
    key = jax.random.PRNGKey(0)
    batch = 8
    input_size = 32
    hidden_layers = [64, 32, 16]

    kx, kp = jax.random.split(key)
    x = jax.random.normal(kx, (batch, input_size), jnp.float32)
    params = init_mlp_params(kp, input_size, hidden_layers)
    fused_params = prepare_fused_params(params, input_size)

    out = mlp_forward(fused_params, x, out_features=hidden_layers[-1])
    out = jax.block_until_ready(out)

    ref = mlp_reference(params, x)
    assert out.shape == (batch, hidden_layers[-1])
    # bf16 weights/activations (f32 accumulation + f32 BN stats) -> loosened tol.
    assert jnp.allclose(out, ref, atol=3e-2, rtol=3e-2), (
        float(jnp.max(jnp.abs(out - ref))))

    print("KERNEL_OK")
</pallas_src>

<mosaic_0001>
module attributes {stable_mosaic.version = 11 : i64} {
  func.func @kernel(%arg0: memref<8x32xf32, #tpu.memory_space<vmem>>, %arg1: memref<32x128xbf16, #tpu.memory_space<vmem>>, %arg2: memref<1x128xf32, #tpu.memory_space<vmem>>, %arg3: memref<1x128xf32, #tpu.memory_space<vmem>>, %arg4: memref<128x128xbf16, #tpu.memory_space<vmem>>, %arg5: memref<1x128xf32, #tpu.memory_space<vmem>>, %arg6: memref<1x128xf32, #tpu.memory_space<vmem>>, %arg7: memref<128x128xbf16, #tpu.memory_space<vmem>>, %arg8: memref<1x128xf32, #tpu.memory_space<vmem>>, %arg9: memref<8x128xf32, #tpu.memory_space<vmem>>) attributes {dimension_semantics = [], scalar_prefetch = 0 : i64, scratch_operands = 0 : i64, tpu.core_type = #tpu.core_type<tc>} {
    %c0 = arith.constant 0 : index
    %c0_0 = arith.constant 0 : index
    %0 = vector.load %arg0[%c0, %c0_0] : memref<8x32xf32, #tpu.memory_space<vmem>>, vector<8x32xf32>
    %1 = arith.truncf %0 : vector<8x32xf32> to vector<8x32xbf16>
    %c0_1 = arith.constant 0 : index
    %c0_2 = arith.constant 0 : index
    %2 = vector.load %arg1[%c0_1, %c0_2] : memref<32x128xbf16, #tpu.memory_space<vmem>>, vector<32x128xbf16>
    %cst = arith.constant dense<0.000000e+00> : vector<8x128xf32>
    %3 = tpu.matmul %1, %2, %cst {dimension_numbers = #tpu.dot_dimension_numbers<[1], [0], [0], [1], [0, 0, 1, 1], [], []>} : vector<8x32xbf16>, vector<32x128xbf16>, vector<8x128xf32> -> vector<8x128xf32>
    %c0_3 = arith.constant 0 : index
    %c0_4 = arith.constant 0 : index
    %4 = vector.load %arg2[%c0_3, %c0_4] : memref<1x128xf32, #tpu.memory_space<vmem>>, vector<1x128xf32>
    %c0_5 = arith.constant 0 : index
    %c0_6 = arith.constant 0 : index
    %5 = vector.load %arg3[%c0_5, %c0_6] : memref<1x128xf32, #tpu.memory_space<vmem>>, vector<1x128xf32>
    %cst_7 = arith.constant dense<0.000000e+00> : vector<128xf32>
    %6 = vector.multi_reduction <add>, %3, %cst_7 [0] : vector<8x128xf32> to vector<128xf32>
    %7 = vector.shape_cast %6 : vector<128xf32> to vector<1x128xf32>
    %cst_8 = arith.constant 1.250000e-01 : f32
    %8 = vector.broadcast %cst_8 : f32 to vector<1x128xf32>
    %9 = arith.mulf %7, %8 : vector<1x128xf32>
    %10 = arith.mulf %3, %3 : vector<8x128xf32>
    %cst_9 = arith.constant dense<0.000000e+00> : vector<128xf32>
    %11 = vector.multi_reduction <add>, %10, %cst_9 [0] : vector<8x128xf32> to vector<128xf32>
    %12 = vector.shape_cast %11 : vector<128xf32> to vector<1x128xf32>
    %cst_10 = arith.constant 1.250000e-01 : f32
    %13 = vector.broadcast %cst_10 : f32 to vector<1x128xf32>
    %14 = arith.mulf %12, %13 : vector<1x128xf32>
    %15 = arith.mulf %9, %9 : vector<1x128xf32>
    %16 = arith.subf %14, %15 : vector<1x128xf32>
    %cst_11 = arith.constant 9.99999974E-6 : f32
    %17 = vector.broadcast %cst_11 : f32 to vector<1x128xf32>
    %18 = arith.addf %16, %17 : vector<1x128xf32>
    %19 = math.rsqrt %18 : vector<1x128xf32>
    %20 = arith.mulf %4, %19 : vector<1x128xf32>
    %21 = arith.mulf %9, %20 : vector<1x128xf32>
    %22 = arith.subf %5, %21 : vector<1x128xf32>
    %23 = vector.broadcast %20 : vector<1x128xf32> to vector<8x128xf32>
    %24 = arith.mulf %3, %23 : vector<8x128xf32>
    %25 = vector.broadcast %22 : vector<1x128xf32> to vector<8x128xf32>
    %26 = arith.addf %24, %25 : vector<8x128xf32>
    %cst_12 = arith.constant 0.000000e+00 : f32
    %27 = vector.broadcast %cst_12 : f32 to vector<8x128xf32>
    %28 = arith.maximumf %26, %27 : vector<8x128xf32>
    %29 = arith.truncf %28 : vector<8x128xf32> to vector<8x128xbf16>
    %c0_13 = arith.constant 0 : index
    %c0_14 = arith.constant 0 : index
    %30 = vector.load %arg4[%c0_13, %c0_14] : memref<128x128xbf16, #tpu.memory_space<vmem>>, vector<128x128xbf16>
    %cst_15 = arith.constant dense<0.000000e+00> : vector<8x128xf32>
    %31 = tpu.matmul %29, %30, %cst_15 {dimension_numbers = #tpu.dot_dimension_numbers<[1], [0], [0], [1], [0, 0, 1, 1], [], []>} : vector<8x128xbf16>, vector<128x128xbf16>, vector<8x128xf32> -> vector<8x128xf32>
    %c0_16 = arith.constant 0 : index
    %c0_17 = arith.constant 0 : index
    %32 = vector.load %arg5[%c0_16, %c0_17] : memref<1x128xf32, #tpu.memory_space<vmem>>, vector<1x128xf32>
    %c0_18 = arith.constant 0 : index
    %c0_19 = arith.constant 0 : index
    %33 = vector.load %arg6[%c0_18, %c0_19] : memref<1x128xf32, #tpu.memory_space<vmem>>, vector<1x128xf32>
    %cst_20 = arith.constant dense<0.000000e+00> : vector<128xf32>
    %34 = vector.multi_reduction <add>, %31, %cst_20 [0] : vector<8x128xf32> to vector<128xf32>
    %35 = vector.shape_cast %34 : vector<128xf32> to vector<1x128xf32>
    %cst_21 = arith.constant 1.250000e-01 : f32
    %36 = vector.broadcast %cst_21 : f32 to vector<1x128xf32>
    %37 = arith.mulf %35, %36 : vector<1x128xf32>
    %38 = arith.mulf %31, %31 : vector<8x128xf32>
    %cst_22 = arith.constant dense<0.000000e+00> : vector<128xf32>
    %39 = vector.multi_reduction <add>, %38, %cst_22 [0] : vector<8x128xf32> to vector<128xf32>
    %40 = vector.shape_cast %39 : vector<128xf32> to vector<1x128xf32>
    %cst_23 = arith.constant 1.250000e-01 : f32
    %41 = vector.broadcast %cst_23 : f32 to vector<1x128xf32>
    %42 = arith.mulf %40, %41 : vector<1x128xf32>
    %43 = arith.mulf %37, %37 : vector<1x128xf32>
    %44 = arith.subf %42, %43 : vector<1x128xf32>
    %cst_24 = arith.constant 9.99999974E-6 : f32
    %45 = vector.broadcast %cst_24 : f32 to vector<1x128xf32>
    %46 = arith.addf %44, %45 : vector<1x128xf32>
    %47 = math.rsqrt %46 : vector<1x128xf32>
    %48 = arith.mulf %32, %47 : vector<1x128xf32>
    %49 = arith.mulf %37, %48 : vector<1x128xf32>
    %50 = arith.subf %33, %49 : vector<1x128xf32>
    %51 = vector.broadcast %48 : vector<1x128xf32> to vector<8x128xf32>
    %52 = arith.mulf %31, %51 : vector<8x128xf32>
    %53 = vector.broadcast %50 : vector<1x128xf32> to vector<8x128xf32>
    %54 = arith.addf %52, %53 : vector<8x128xf32>
    %cst_25 = arith.constant 0.000000e+00 : f32
    %55 = vector.broadcast %cst_25 : f32 to vector<8x128xf32>
    %56 = arith.maximumf %54, %55 : vector<8x128xf32>
    %57 = arith.truncf %56 : vector<8x128xf32> to vector<8x128xbf16>
    %c0_26 = arith.constant 0 : index
    %c0_27 = arith.constant 0 : index
    %58 = vector.load %arg7[%c0_26, %c0_27] : memref<128x128xbf16, #tpu.memory_space<vmem>>, vector<128x128xbf16>
    %cst_28 = arith.constant dense<0.000000e+00> : vector<8x128xf32>
    %59 = tpu.matmul %57, %58, %cst_28 {dimension_numbers = #tpu.dot_dimension_numbers<[1], [0], [0], [1], [0, 0, 1, 1], [], []>} : vector<8x128xbf16>, vector<128x128xbf16>, vector<8x128xf32> -> vector<8x128xf32>
    %c0_29 = arith.constant 0 : index
    %c0_30 = arith.constant 0 : index
    %60 = vector.load %arg8[%c0_29, %c0_30] : memref<1x128xf32, #tpu.memory_space<vmem>>, vector<1x128xf32>
    %61 = vector.broadcast %60 : vector<1x128xf32> to vector<8x128xf32>
    %62 = arith.addf %59, %61 : vector<8x128xf32>
    %c0_31 = arith.constant 0 : index
    %c0_32 = arith.constant 0 : index
    %63 = vector.load %arg9[%c0_31, %c0_32] : memref<8x128xf32, #tpu.memory_space<vmem>>, vector<8x128xf32>
    tpu.vector_store %arg9[%c0_31, %c0_32], %62 {strides = array<i32>} : memref<8x128xf32, #tpu.memory_space<vmem>>, vector<8x128xf32>,
    return
  }
}

</mosaic_0001>

<bundles_post_ra>
// kernel: mlp_forward.1
= control target key start
LH: loop header
LB: loop body
LE: loop exit
PB: predicated region body
PF: predicated region fallthrough
CT: control target
= control target key end

     0   :  { %14 = vsyncpa [#allocation3], 0  ;;  %s1098_s0 = inlined_call_operand.hbm [shape: f32[8,32], index: 0, kind: input, shape index: {}]   ;;  %s1099_s1 = inlined_call_operand.hbm [shape: bf16[32,128], index: 1, kind: input, shape index: {}]   ;;  %s1100_s2 = inlined_call_operand.hbm [shape: f32[1,128], index: 2, kind: input, shape index: {}]   ;;  %s1101_s3 = inlined_call_operand.hbm [shape: f32[1,128], index: 3, kind: input, shape index: {}]   ;;  %s1102_s4 = inlined_call_operand.hbm [shape: bf16[128,128], index: 4, kind: input, shape index: {}]   ;;  %s1103_s5 = inlined_call_operand.hbm [shape: f32[1,128], index: 5, kind: input, shape index: {}]   ;;  %s1104_s6 = inlined_call_operand.hbm [shape: f32[1,128], index: 6, kind: input, shape index: {}]   ;;  %s1105_s7 = inlined_call_operand.hbm [shape: bf16[128,128], index: 7, kind: input, shape index: {}]   ;;  %s1106_s8 = inlined_call_operand.hbm [shape: f32[1,128], index: 8, kind: input, shape index: {}]   ;;  %s1107_s9 = inlined_call_operand.hbm [shape: f32[8,128], index: 9, kind: output, shape index: {}]  }
   0x1   :  { %15 = vsyncpa [#allocation6], 0 }
   0x2   :  { %16 = vsyncpa [#allocation9], 0 }
   0x3   :  { %17 = vsyncpa [#allocation12], 0 }
   0x4   :  { %18 = vsyncpa [#allocation15], 0 }
   0x5   :  { %19 = vsyncpa [#allocation4], 0  ;;  %s878_s30 = smov [#allocation5]   ;;  %s646_s13 = scalar_lea.hbm %s1099_s1, 256 }
   0x6   :  { %s35_s10 = sshll.u32 %s878_s30, 4  ;;  %p647_p0 = scmp.ne.s32.totalorder %s1099_s1, %s646_s13  ;;  %s36_s10 = int_to_ptr.vmem [resolvable:$true] %s35_s10 }
   0x7   :  { %p650_p1 = scmp.lt.u32.totalorder %s646_s13, %s1099_s1 }
   0x9   :  { %p652_p2 = pnand %p650_p1, %p647_p0 }
   0xb   :  { %655 = shalt.err (!%p652_p2)
}
   0xc   :  { %s656_s18 = scalar_lea.vmem %s36_s10, 256  ;;  %p661_p4 = scmp.lt.s32.totalorder %s36_s10, %s36_s10 }
   0xd   :  { %p657_p3 = scmp.ne.s32.totalorder %s36_s10, %s656_s18  ;;  %p662_p5 = scmp.lt.s32.totalorder %s656_s18, %s656_s18 }
   0xf   :  { %p663_p6 = por %p662_p5, %p661_p4 }
  0x11   :  { %p664_p7 = pnand %p663_p6, %p657_p3 }
  0x13   :  { %667 = shalt.err (!%p664_p7)
}
  0x14   :  { %s879_s19 = smov 64   ;;  %s880_s20 = smov 4  }
  0x15   :  { %41 = dma.hbm_to_vmem [thread:$0]  %s1099_s1, 256, %s36_s10, [#allocation6], %s879_s19, %s879_s19, %s880_s20  }
  0x16   :  { %s881_s23 = smov [#allocation8]   ;;  %s882_s25 = smov [#allocation11]  }
  0x17   :  { %s58_s24 = sshll.u32 %s881_s23, 4  ;;  %s80_s26 = sshll.u32 %s882_s25, 4  ;;  %s59_s24 = int_to_ptr.vmem [resolvable:$true] %s58_s24  ;;  %s81_s26 = int_to_ptr.vmem [resolvable:$true] %s80_s26 }
  0x18   :  { %s668_s29 = scalar_lea.hbm %s1101_s3, 16 }
  0x19   :  { %p669_p8 = scmp.ne.s32.totalorder %s1101_s3, %s668_s29  ;;  %p672_p9 = scmp.lt.u32.totalorder %s668_s29, %s1101_s3 }
  0x1b   :  { %p674_p10 = pnand %p672_p9, %p669_p8 }
  0x1d   :  { %677 = shalt.err (!%p674_p10)
}
  0x1e   :  { %s678_s1 = scalar_lea.vmem %s59_s24, 16  ;;  %s682_s10 = scalar_lea.vmem %s59_s24, 32 }
  0x1f   :  { %p679_p11 = scmp.ne.s32.totalorder %s59_s24, %s678_s1  ;;  %p683_p12 = scmp.lt.s32.totalorder %s59_s24, %s59_s24 }
  0x20   :  { %p684_p13 = scmp.lt.s32.totalorder %s682_s10, %s678_s1 }
  0x22   :  { %p685_p0 = por %p684_p13, %p683_p12 }
  0x24   :  { %p686_p1 = pnand %p685_p0, %p679_p11 }
  0x26   :  { %689 = shalt.err (!%p686_p1)
}
  0x27   :  { %61 = dma.hbm_to_vmem [thread:$0]  %s1101_s3, 16, %s59_s24, [#allocation9]  }
  0x28   :  { %s690_s18 = scalar_lea.hbm %s1103_s5, 16 }
  0x29   :  { %p691_p2 = scmp.ne.s32.totalorder %s1103_s5, %s690_s18  ;;  %p694_p3 = scmp.lt.u32.totalorder %s690_s18, %s1103_s5 }
  0x2b   :  { %p696_p4 = pnand %p694_p3, %p691_p2 }
  0x2d   :  { %699 = shalt.err (!%p696_p4)
}
  0x2e   :  { %s700_s27 = scalar_lea.vmem %s81_s26, 16  ;;  %s704_s28 = scalar_lea.vmem %s81_s26, 32 }
  0x2f   :  { %p701_p5 = scmp.ne.s32.totalorder %s81_s26, %s700_s27  ;;  %p705_p6 = scmp.lt.s32.totalorder %s81_s26, %s81_s26 }
  0x30   :  { %p706_p7 = scmp.lt.s32.totalorder %s704_s28, %s700_s27 }
  0x32   :  { %p707_p8 = por %p706_p7, %p705_p6 }
  0x34   :  { %p708_p9 = pnand %p707_p8, %p701_p5 }
  0x36   :  { %711 = shalt.err (!%p708_p9)
}
  0x37   :  { %83 = dma.hbm_to_vmem [thread:$0]  %s1103_s5, 16, %s81_s26, [#allocation12]  }
  0x38   :  { %s883_s29 = smov [#allocation14]   ;;  %s884_s11 = smov [#allocation2]  }
  0x39   :  { %s99_s30 = sshll.u32 %s883_s29, 4  ;;  %s26_s12 = sshll.u32 %s884_s11, 4  ;;  %s100_s30 = int_to_ptr.vmem [resolvable:$true] %s99_s30  ;;  %s27_s12 = int_to_ptr.vmem [resolvable:$true] %s26_s12 }
  0x3a   :  { %s712_s10 = scalar_lea.hbm %s1105_s7, 1024 }
  0x3b   :  { %p713_p10 = scmp.ne.s32.totalorder %s1105_s7, %s712_s10  ;;  %p716_p11 = scmp.lt.u32.totalorder %s712_s10, %s1105_s7 }
  0x3d   :  { %p718_p12 = pnand %p716_p11, %p713_p10 }
  0x3f   :  { %721 = shalt.err (!%p718_p12)
}
  0x40   :  { %s722_s5 = scalar_lea.vmem %s100_s30, 1024  ;;  %p727_p0 = scmp.lt.s32.totalorder %s100_s30, %s100_s30 }
  0x41   :  { %p723_p13 = scmp.ne.s32.totalorder %s100_s30, %s722_s5  ;;  %p728_p1 = scmp.lt.s32.totalorder %s722_s5, %s722_s5 }
  0x43   :  { %p729_p2 = por %p728_p1, %p727_p0 }
  0x45   :  { %p730_p3 = pnand %p729_p2, %p723_p13 }
  0x47   :  { %733 = shalt.err (!%p730_p3)
}
  0x48   :  { %105 = dma.hbm_to_vmem [thread:$0]  %s1105_s7, 1024, %s100_s30, [#allocation15], %s879_s19, %s879_s19, %s880_s20  }
  0x49   :  { %s734_s23 = scalar_lea.hbm %s1098_s0, 128 }
  0x4a   :  { %p735_p4 = scmp.ne.s32.totalorder %s1098_s0, %s734_s23  ;;  %p738_p5 = scmp.lt.u32.totalorder %s734_s23, %s1098_s0 }
  0x4c   :  { %p740_p6 = pnand %p738_p5, %p735_p4 }
  0x4e   :  { %743 = shalt.err (!%p740_p6)
}
  0x4f   :  { %s744_s24 = scalar_lea.vmem %s27_s12, 128  ;;  %p749_p8 = scmp.lt.s32.totalorder %s27_s12, %s27_s12 }
  0x50   :  { %p745_p7 = scmp.ne.s32.totalorder %s27_s12, %s744_s24  ;;  %p750_p9 = scmp.lt.s32.totalorder %s744_s24, %s744_s24 }
  0x52   :  { %p751_p10 = por %p750_p9, %p749_p8 }
  0x54   :  { %p752_p11 = pnand %p751_p10, %p745_p7 }
  0x56   :  { %755 = shalt.err (!%p752_p11)
}
  0x57   :  { %29 = dma.hbm_to_vmem [thread:$0]  %s1098_s0, 128, %s27_s12, [#allocation3]  }
  0x58   :  { %s885_s30 = smov [#allocation7]   ;;  %s886_s13 = smov [#allocation10]  }
  0x59   :  { %s48_s11 = sshll.u32 %s885_s30, 4  ;;  %s67_s1 = sshll.u32 %s886_s13, 4  ;;  %s49_s11 = int_to_ptr.vmem [resolvable:$true] %s48_s11  ;;  %s68_s1 = int_to_ptr.vmem [resolvable:$true] %s67_s1 }
  0x5a   :  { %s756_s15 = scalar_lea.hbm %s1100_s2, 16 }
  0x5b   :  { %p757_p12 = scmp.ne.s32.totalorder %s1100_s2, %s756_s15  ;;  %p760_p13 = scmp.lt.u32.totalorder %s756_s15, %s1100_s2 }
  0x5d   :  { %p762_p0 = pnand %p760_p13, %p757_p12 }
  0x5f   :  { %765 = shalt.err (!%p762_p0)
}
  0x60   :  { %s766_s0 = scalar_lea.vmem %s49_s11, 16  ;;  %s770_s12 = scalar_lea.vmem %s49_s11, 32 }
  0x61   :  { %p767_p1 = scmp.ne.s32.totalorder %s49_s11, %s766_s0  ;;  %p771_p2 = scmp.lt.s32.totalorder %s49_s11, %s49_s11 }
  0x62   :  { %p772_p3 = scmp.lt.s32.totalorder %s770_s12, %s766_s0 }
  0x64   :  { %p773_p4 = por %p772_p3, %p771_p2 }
  0x66   :  { %p774_p5 = pnand %p773_p4, %p767_p1 }
  0x68   :  { %777 = shalt.err (!%p774_p5)
}
  0x69   :  { %51 = dma.hbm_to_vmem [thread:$0]  %s1100_s2, 16, %s49_s11, [#allocation6]  }
  0x6a   :  { %s778_s25 = scalar_lea.hbm %s1102_s4, 1024 }
  0x6b   :  { %p779_p6 = scmp.ne.s32.totalorder %s1102_s4, %s778_s25  ;;  %p782_p7 = scmp.lt.u32.totalorder %s778_s25, %s1102_s4 }
  0x6d   :  { %p784_p8 = pnand %p782_p7, %p779_p6 }
  0x6f   :  { %787 = shalt.err (!%p784_p8)
}
  0x70   :  { %s788_s7 = scalar_lea.vmem %s68_s1, 1024  ;;  %p793_p10 = scmp.lt.s32.totalorder %s68_s1, %s68_s1 }
  0x71   :  { %p789_p9 = scmp.ne.s32.totalorder %s68_s1, %s788_s7  ;;  %p794_p11 = scmp.lt.s32.totalorder %s788_s7, %s788_s7 }
  0x73   :  { %p795_p12 = por %p794_p11, %p793_p10 }
  0x75   :  { %p796_p13 = pnand %p795_p12, %p789_p9 }
  0x77   :  { %799 = shalt.err (!%p796_p13)
}
  0x78   :  { %73 = dma.hbm_to_vmem [thread:$0]  %s1102_s4, 1024, %s68_s1, [#allocation9], %s879_s19, %s879_s19, %s880_s20  }
  0x79   :  { %s887_s30 = smov [#allocation13]   ;;  %s888_s13 = smov [#allocation16]  }
  0x7a   :  { %s90_s11 = sshll.u32 %s887_s30, 4  ;;  %s112_s10 = sshll.u32 %s888_s13, 4  ;;  %s91_s11 = int_to_ptr.vmem [resolvable:$true] %s90_s11  ;;  %s113_s10 = int_to_ptr.vmem [resolvable:$true] %s112_s10 }
  0x7b   :  { %s800_s16 = scalar_lea.hbm %s1104_s6, 16 }
  0x7c   :  { %p801_p0 = scmp.ne.s32.totalorder %s1104_s6, %s800_s16  ;;  %p804_p1 = scmp.lt.u32.totalorder %s800_s16, %s1104_s6 }
  0x7e   :  { %p806_p2 = pnand %p804_p1, %p801_p0 }
  0x80   :  { %809 = shalt.err (!%p806_p2)
}
  0x81   :  { %s810_s4 = scalar_lea.vmem %s91_s11, 16  ;;  %s814_s19 = scalar_lea.vmem %s91_s11, 32 }
  0x82   :  { %p811_p3 = scmp.ne.s32.totalorder %s91_s11, %s810_s4  ;;  %p815_p4 = scmp.lt.s32.totalorder %s91_s11, %s91_s11 }
  0x83   :  { %p816_p5 = scmp.lt.s32.totalorder %s814_s19, %s810_s4 }
  0x85   :  { %p817_p6 = por %p816_p5, %p815_p4 }
  0x87   :  { %p818_p7 = pnand %p817_p6, %p811_p3 }
  0x89   :  { %821 = shalt.err (!%p818_p7)
}
  0x8a   :  { %93 = dma.hbm_to_vmem [thread:$0]  %s1104_s6, 16, %s91_s11, [#allocation12]  }
  0x8b   :  { %s822_s21 = scalar_lea.hbm %s1106_s8, 16 }
  0x8c   :  { %p823_p8 = scmp.ne.s32.totalorder %s1106_s8, %s822_s21  ;;  %p826_p9 = scmp.lt.u32.totalorder %s822_s21, %s1106_s8 }
  0x8e   :  { %p828_p10 = pnand %p826_p9, %p823_p8 }
  0x90   :  { %831 = shalt.err (!%p828_p10)
}
  0x91   :  { %s832_s28 = scalar_lea.vmem %s113_s10, 16  ;;  %s836_s3 = scalar_lea.vmem %s113_s10, 32 }
  0x92   :  { %p833_p11 = scmp.ne.s32.totalorder %s113_s10, %s832_s28  ;;  %p837_p12 = scmp.lt.s32.totalorder %s113_s10, %s113_s10 }
  0x93   :  { %p838_p13 = scmp.lt.s32.totalorder %s836_s3, %s832_s28 }
  0x95   :  { %p839_p0 = por %p838_p13, %p837_p12 }
  0x97   :  { %p840_p1 = pnand %p839_p0, %p833_p11 }
  0x99   :  { %843 = shalt.err (!%p840_p1)
}
  0x9a   :  { %115 = dma.hbm_to_vmem [thread:$0]  %s1106_s8, 16, %s113_s10, [#allocation15]  }
  0x9b   :  { %866 = dma.done.wait [#allocation3], 128  }
  0x9c   :  { %867 = vsyncadd [#allocation3], 4294967168 }
  0x9d   :  { %868 = dma.done.wait [#allocation6], 272  }
  0x9e   :  { %869 = vsyncadd [#allocation6], 4294967024 }
  0x9f   :  { %870 = dma.done.wait [#allocation9], 1040  }
  0xa0   :  { %871 = vsyncadd [#allocation9], 4294966256 }
  0xa1   :  { %872 = dma.done.wait [#allocation12], 32  }
  0xa2   :  { %873 = vsyncadd [#allocation12], 4294967264 }
  0xa3   :  { %874 = dma.done.wait [#allocation15], 1040  }
  0xa4   :  { %875 = vsyncadd [#allocation15], 4294966256  ;;  %v889_v0 = vmov 0.0   ;;  %vm890_vm0 = vmmov 0   ;;  %v624_v1 = vld [vmem:[#allocation5] sm:$0xff]   ;;  %v625_v2 = vld [vmem:[#allocation5 + $0x8] sm:$0xff]   ;;  %v231_v35 = vlaneseq }
  0xa5   :  { %562 = vmatprep.subr.bf16.mxu0 %v889_v0  ;;  %566 = vmatprep.mubr.msk.bf16.mxu0 %vm890_vm0, %v889_v0  ;;  %v144_v3 = vld [vmem:[#allocation2] sm:$0xff]  ;;  %vm162_vm1 = vcmask 261120   ;;  %v628_v7 = vld [vmem:[#allocation10 + $0x10] sm:$0xff]   ;;  %v629_v8 = vld [vmem:[#allocation10 + $0x18] sm:$0xff]   ;;  %s891_s8 = smov [#allocation17]  }
  0xa6   :  { %570 = vmatprep.subr.bf16.mxu1 %v889_v0  ;;  %586 = vmatprep.mubr.msk.bf16.mxu1 %vm890_vm0, %v889_v0  ;;  %v145_v4 = vpack.c.bf16 %v144_v3, %v144_v3  ;;  %v626_v5 = vld [vmem:[#allocation10] sm:$0xff]   ;;  %v627_v6 = vld [vmem:[#allocation10 + $0x8] sm:$0xff]   ;;  %v632_v11 = vld [vmem:[#allocation10 + $0x30] sm:$0xff]   ;;  %v232_v36 = vshrl.u32 %v231_v35, 7  ;;  %s508_s7 = sshll.u32 %s891_s8, 4  ;;  %s509_s7 = int_to_ptr.vmem [resolvable:$true] %s508_s7 }
  0xa7   :  { %563 = vmatpush3.bf16.msra.mxu0 %v624_v1  ;;  %571 = vmatpush3.bf16.msra.mxu1 %v626_v5  ;;  %v630_v9 = vld [vmem:[#allocation10 + $0x20] sm:$0xff]   ;;  %v631_v10 = vld [vmem:[#allocation10 + $0x28] sm:$0xff]   ;;  %v633_v12 = vld [vmem:[#allocation10 + $0x38] sm:$0xff]   ;;  %s844_s2 = scalar_lea.vmem %s509_s7, 128  ;;  %p849_p3 = scmp.lt.s32.totalorder %s509_s7, %s509_s7 }
  0xa8   :  { %564 = vmatprep.subr.bf16.mxu0 %v889_v0  ;;  %572 = vmatprep.subr.bf16.mxu1 %v889_v0  ;;  %v206_v37 = vld [vmem:[#allocation7] sm:$0x1]  ;;  %v1073_v38 = vsub.s32 0, %v232_v36  ;;  %v207_v41 = vld [vmem:[#allocation8] sm:$0x1]  ;;  %v634_v50 = vld [vmem:[#allocation14] sm:$0xff]   ;;  %p845_p2 = scmp.ne.s32.totalorder %s509_s7, %s844_s2  ;;  %p850_p4 = scmp.lt.s32.totalorder %s844_s2, %s844_s2 }
  0xa9   :  { %v635_v51 = vld [vmem:[#allocation14 + $0x8] sm:$0xff]   ;;  %v636_v52 = vld [vmem:[#allocation14 + $0x10] sm:$0xff]   ;;  %v637_v53 = vld [vmem:[#allocation14 + $0x18] sm:$0xff]  }
  0xaa   :  { %v638_v54 = vld [vmem:[#allocation14 + $0x20] sm:$0xff]   ;;  %v639_v55 = vld [vmem:[#allocation14 + $0x28] sm:$0xff]   ;;  %v640_v56 = vld [vmem:[#allocation14 + $0x30] sm:$0xff]   ;;  %p851_p5 = por %p850_p4, %p849_p3 }
  0xab   :  { %565 = vmatpush3.bf16.msra.mxu0 %v625_v2  ;;  %573 = vmatpush3.bf16.msra.mxu1 %v627_v6  ;;  %v641_v57 = vld [vmem:[#allocation14 + $0x38] sm:$0xff]  }
  0xac   :  { %590 = vmatprep.subr.bf16.mxu0 %v889_v0  ;;  %574 = vmatprep.subr.bf16.mxu1 %v889_v0  ;;  %p852_p6 = pnand %p851_p5, %p845_p2 }
  0xae   :  { %567 = vmatmul.mubr.msk.bf16.vlgmr.msra.gmra.mrb[0].mxu0 %vm162_vm1, %v145_v4 }
  0xaf   :  { %606 = vmatprep.mubr.msk.bf16.mxu0 %vm890_vm0, %v889_v0  ;;  %575 = vmatpush3.bf16.msra.mxu1 %v628_v7 }
  0xb0   :  { %576 = vmatprep.subr.bf16.mxu1 %v889_v0  ;;  %591 = vmatpush3.bf16.msra.mxu0 %v634_v50 }
  0xb1   :  { %592 = vmatprep.subr.bf16.mxu0 %v889_v0 }
  0xb3   :  { %577 = vmatpush3.bf16.msra.mxu1 %v629_v8 }
  0xb4   :  { %578 = vmatprep.subr.bf16.mxu1 %v889_v0  ;;  %593 = vmatpush3.bf16.msra.mxu0 %v635_v51 }
  0xb5   :  { %594 = vmatprep.subr.bf16.mxu0 %v889_v0 }
  0xb7   :  { %579 = vmatpush3.bf16.msra.mxu1 %v630_v9 }
  0xb8   :  { %580 = vmatprep.subr.bf16.mxu1 %v889_v0  ;;  %595 = vmatpush3.bf16.msra.mxu0 %v636_v52 }
  0xb9   :  { %596 = vmatprep.subr.bf16.mxu0 %v889_v0 }
  0xbb   :  { %581 = vmatpush3.bf16.msra.mxu1 %v631_v10 }
  0xbc   :  { %582 = vmatprep.subr.bf16.mxu1 %v889_v0  ;;  %597 = vmatpush3.bf16.msra.mxu0 %v637_v53 }
  0xbd   :  { %598 = vmatprep.subr.bf16.mxu0 %v889_v0 }
  0xbf   :  { %583 = vmatpush3.bf16.msra.mxu1 %v632_v11 }
  0xc0   :  { %584 = vmatprep.subr.bf16.mxu1 %v889_v0  ;;  %599 = vmatpush3.bf16.msra.mxu0 %v638_v54 }
  0xc1   :  { %600 = vmatprep.subr.bf16.mxu0 %v889_v0 }
  0xc3   :  { %585 = vmatpush3.bf16.msra.mxu1 %v633_v12 }
  0xc4   :  { %601 = vmatpush3.bf16.msra.mxu0 %v639_v55 }
  0xc5   :  { %602 = vmatprep.subr.bf16.mxu0 %v889_v0 }
  0xc8   :  { %603 = vmatpush3.bf16.msra.mxu0 %v640_v56 }
  0xc9   :  { %604 = vmatprep.subr.bf16.mxu0 %v889_v0 }
  0xcc   :  { %605 = vmatpush3.bf16.msra.mxu0 %v641_v57 }
 0x181   :  { %v200_v13 = vpop.f32.mrb[0].mxu0 }
 0x182   :  { %v208_v14 = vrot.slane %v200_v13, 4  ;;  %v215_v15 = vmul.f32 %v200_v13, %v200_v13  ;;  %v568_v16 = vpop.f32.mrb[1].mxu0 }
 0x183   :  { %v203_v17 = vpop.f32.mrb[2].mxu0  ;;  %v350_v16 = vld [vmem:[#allocation11] sm:$0x1] }
 0x184   :  { %v209_v18 = vadd.f32 %v208_v14, %v200_v13  ;;  %v216_v19 = vrot.slane %v215_v15, 4  ;;  %v569_v20 = vpop.f32.mrb[3].mxu0 }
 0x186   :  { %v210_v21 = vrot.slane %v209_v18, 2  ;;  %v217_v22 = vadd.f32 %v216_v19, %v215_v15  ;;  %v351_v19 = vld [vmem:[#allocation13] sm:$0x1] }
 0x188   :  { %v211_v23 = vadd.f32 %v210_v21, %v209_v18  ;;  %v218_v24 = vrot.slane %v217_v22, 2 }
 0x18a   :  { %v212_v25 = vrot.slane %v211_v23, 1  ;;  %v219_v26 = vadd.f32 %v218_v24, %v217_v22 }
 0x18c   :  { %v213_v27 = vadd.f32 %v212_v25, %v211_v23  ;;  %v220_v28 = vrot.slane %v219_v26, 1 }
 0x18e   :  { %v214_v29 = vmul.f32 0.125, %v213_v27  ;;  %v221_v30 = vadd.f32 %v220_v28, %v219_v26  ;;  %v532_v28 = vld [vmem:[#allocation16] ss:$0 sm:$0xff] }
 0x190   :  { %v222_v31 = vmul.f32 0.125, %v221_v30  ;;  %v223_v32 = vmul.f32 %v214_v29, %v214_v29 }
 0x192   :  { %v224_v33 = vsub.f32 %v222_v31, %v223_v32 }
 0x194   :  { %v225_v34 = vadd.f32 1e-05, %v224_v33 }
 0x196   :  { %642 = vrsqrt.f32 %v225_v34 }
 0x1a0   :  { %v643_v39 = vpop.eup %642 }
 0x1a1   :  { %v227_v40 = vmul.f32 %v643_v39, %v206_v37 }
 0x1a3   :  { %v234_v42 = vrot.slane %v227_v40, %v1073_v38  ;;  %v228_v43 = vmul.f32 %v227_v40, %v214_v29 }
 0x1a5   :  { %v229_v44 = vsub.f32 %v207_v41, %v228_v43  ;;  %v236_v45 = vmul.f32 %v234_v42, %v200_v13 }
 0x1a7   :  { %v241_v46 = vrot.slane %v229_v44, %v1073_v38 }
 0x1a9   :  { %v243_v47 = vadd.f32 %v241_v46, %v236_v45 }
 0x1ab   :  { %v244_v48 = vmax.f32 %v243_v47, 0.0 }
 0x1ad   :  { %v245_v49 = vpack.c.bf16 %v244_v48, %v244_v48 }
 0x1af   :  { %587 = vmatmul.mubr.bf16.vlgmr.msra.gmra.mrb[0].mxu1 %v245_v49 }
 0x282   :  { %v344_v58 = vpop.f32.mrb[0].mxu1 }
 0x283   :  { %v352_v59 = vrot.slane %v344_v58, 4  ;;  %v359_v60 = vmul.f32 %v344_v58, %v344_v58  ;;  %v588_v61 = vpop.f32.mrb[1].mxu1 }
 0x284   :  { %v347_v62 = vpop.f32.mrb[2].mxu1 }
 0x285   :  { %v353_v63 = vadd.f32 %v352_v59, %v344_v58  ;;  %v360_v1 = vrot.slane %v359_v60, 4  ;;  %v589_v2 = vpop.f32.mrb[3].mxu1 }
 0x287   :  { %v354_v3 = vrot.slane %v353_v63, 2  ;;  %v361_v4 = vadd.f32 %v360_v1, %v359_v60 }
 0x289   :  { %v355_v5 = vadd.f32 %v354_v3, %v353_v63  ;;  %v362_v6 = vrot.slane %v361_v4, 2 }
 0x28b   :  { %v356_v7 = vrot.slane %v355_v5, 1  ;;  %v363_v8 = vadd.f32 %v362_v6, %v361_v4 }
 0x28d   :  { %v357_v9 = vadd.f32 %v356_v7, %v355_v5  ;;  %v364_v10 = vrot.slane %v363_v8, 1 }
 0x28f   :  { %v358_v11 = vmul.f32 0.125, %v357_v9  ;;  %v365_v0 = vadd.f32 %v364_v10, %v363_v8 }
 0x291   :  { %v366_v12 = vmul.f32 0.125, %v365_v0  ;;  %v367_v13 = vmul.f32 %v358_v11, %v358_v11 }
 0x293   :  { %v368_v14 = vsub.f32 %v366_v12, %v367_v13 }
 0x295   :  { %v369_v15 = vadd.f32 1e-05, %v368_v14 }
 0x297   :  { %644 = vrsqrt.f32 %v369_v15 }
 0x2a1   :  { %v645_v17 = vpop.eup %644 }
 0x2a2   :  { %v371_v18 = vmul.f32 %v645_v17, %v350_v16 }
 0x2a4   :  { %v372_v20 = vmul.f32 %v371_v18, %v358_v11  ;;  %v378_v21 = vrot.slane %v371_v18, %v1073_v38 }
 0x2a6   :  { %v373_v22 = vsub.f32 %v351_v19, %v372_v20  ;;  %v380_v23 = vmul.f32 %v378_v21, %v344_v58 }
 0x2a8   :  { %v385_v24 = vrot.slane %v373_v22, %v1073_v38 }
 0x2aa   :  { %v387_v25 = vadd.f32 %v385_v24, %v380_v23 }
 0x2ac   :  { %v388_v26 = vmax.f32 %v387_v25, 0.0 }
 0x2ae   :  { %v389_v27 = vpack.c.bf16 %v388_v26, %v388_v26 }
 0x2b0   :  { %607 = vmatmul.mubr.bf16.vlgmr.msra.gmra.mrb[4].mxu0 %v389_v27 }
 0x383   :  { %v495_v29 = vpop.f32.mrb[4].mxu0 }
 0x384   :  { %v496_v30 = vadd.f32 %v532_v28, %v495_v29  ;;  %v608_v31 = vpop.f32.mrb[5].mxu0 }
 0x385   :  { %v498_v32 = vpop.f32.mrb[6].mxu0 }
 0x386   :  { %501 = vst [vmem:[#allocation17] sm:$0xff] %v496_v30  ;;  %v609_v33 = vpop.f32.mrb[7].mxu0 }
 0x387   :  { %855 = shalt.err (!%p852_p6)
}
 0x388   :  { %s856_s11 = scalar_lea.hbm %s1107_s9, 128 }
 0x389   :  { %p857_p7 = scmp.ne.s32.totalorder %s1107_s9, %s856_s11  ;;  %p860_p8 = scmp.lt.u32.totalorder %s856_s11, %s1107_s9 }
 0x38b   :  { %p862_p9 = pnand %p860_p8, %p857_p7 }
 0x38d   :  { %865 = shalt.err (!%p862_p9)
}
 0x38e   :  { %511 = dma.vmem_to_hbm [thread:$0]  %s509_s7, 128, %s1107_s9, [#allocation4]  }
 0x38f   :  { %876 = dma.done.wait [#allocation4], 128  }
 0x390   :  { %877 = vsyncadd [#allocation4], 4294967168 }
 0x391   :  { %515 = vsyncpa [#allocation3], 1 }
 0x392   :  { %516 = vsyncpa [#allocation6], 1 }
 0x393   :  { %517 = vsyncpa [#allocation9], 1 }
 0x394   :  { %518 = vsyncpa [#allocation12], 1 }
 0x395   :  { %519 = vsyncpa [#allocation15], 1 }
 0x396   :  { %520 = vsyncpa [#allocation4], 1 }

</bundles_post_ra>
